<compile_context>
chip_gen: v5e
topology: v5e:2x2
jax: 0.10.0
libtpu: 0.0.40
codegen_flags: <defaults>
</compile_context>

<pallas_src>
import jax
import jax.numpy as jnp
from jax.experimental import pallas as pl
from jax.experimental.pallas import tpu as pltpu

BN_EPS = 1e-5
H1, H2 = 100, 50            # logical hidden widths of the PyTorch module
H1P, H2P = 128, 128         # lane-padded widths (multiples of 128)
OUT_P = 128                 # padded width of the final projection (col 0 real)
MAX_TILE_B = 8192           # diminishing returns beyond this
VMEM_STREAM_BUDGET = 24 * 1024 * 1024   # budget for the streamed x/out buffers


def _round_up(n, m):
    return ((n + m - 1) // m) * m


# --------------------------------------------------------------------------
# Kernel
# --------------------------------------------------------------------------
def _prenet_kernel(x_ref, w1_ref, b1_ref, w2_ref, b2_ref, w3_ref, o_ref):
    # BN already folded into (w, b); dropout is identity (eval mode).
    x = x_ref[...]                                           # (tile_b, F_in) bf16

    # linear1 (+ folded bn1) + relu : (tile_b, F_in) @ (F_in, 128) on the MXU
    h = jnp.dot(x, w1_ref[...], preferred_element_type=jnp.float32)
    h = jnp.maximum(h + b1_ref[...], 0.0).astype(jnp.bfloat16)

    # linear2 (+ folded bn2) + relu : (tile_b, 128) @ (128, 128) on the MXU
    # (b2 padding lane H2 is 1.0 — the "ones column" that carries b3 below)
    h = jnp.dot(h, w2_ref[...], preferred_element_type=jnp.float32)
    h = jnp.maximum(h + b2_ref[...], 0.0).astype(jnp.bfloat16)

    # linear3 (H2 -> 1) as an MXU matmul: w3 padded to (128, 128), only
    # column 0 is meaningful and its row H2 holds b3 (multiplied by the 1.0
    # injected via the b2 padding). Columns 1..127 are zero and ignored.
    z = jnp.dot(h, w3_ref[...], preferred_element_type=jnp.float32)
    o_ref[...] = jax.nn.sigmoid(z[:, :1]).astype(o_ref.dtype)


# --------------------------------------------------------------------------
# Param prep: fold eval-mode BN into the linears, pad lanes to 128, cast
# the matmul operands to bf16 (biases stay f32; accumulation is f32).
# --------------------------------------------------------------------------
def fold_and_pad_params(p, compute_dtype=jnp.bfloat16):
    s1 = p["g1"] * jax.lax.rsqrt(p["rv1"] + BN_EPS)          # (1, H1)
    w1 = p["w1"] * s1                                        # (F_in, H1)
    b1 = (p["b1"] - p["rm1"]) * s1 + p["beta1"]              # (1, H1)

    s2 = p["g2"] * jax.lax.rsqrt(p["rv2"] + BN_EPS)          # (1, H2)
    w2 = p["w2"] * s2                                        # (H1, H2)
    b2 = (p["b2"] - p["rm2"]) * s2 + p["beta2"]              # (1, H2)

    w1p = jnp.pad(w1, ((0, 0), (0, H1P - H1))).astype(compute_dtype)   # (F_in,128)
    b1p = jnp.pad(b1, ((0, 0), (0, H1P - H1)))                         # (1,128) f32
    w2p = jnp.pad(w2, ((0, H1P - H1), (0, H2P - H2))).astype(compute_dtype)  # (128,128)

    # b2 padding: lanes [H2+1, 128) are 0 (identity through relu); lane H2 is
    # 1.0 so that w3 row H2 can inject the final bias b3 through the matmul.
    # NOTE: this nonzero pad entry is intentional — do not "clean it up".
    b2p = jnp.zeros((1, H2P), jnp.float32)
    b2p = b2p.at[:, :H2].set(b2).at[:, H2].set(1.0)                    # (1,128) f32

    # w3 padded to (128, 128): column 0 = [w3 ; b3 ; 0 ...], other columns 0.
    w3_col = jnp.concatenate([p["w3"], p["b3"]], axis=0)               # (H2+1, 1)
    w3p = jnp.zeros((H2P, OUT_P), jnp.float32)
    w3p = w3p.at[: H2 + 1, :1].set(w3_col).astype(compute_dtype)       # (128,128)

    return w1p, b1p, w2p, b2p, w3p


# --------------------------------------------------------------------------
# Tile sizing (VMEM-aware, v7x-friendly)
# --------------------------------------------------------------------------
def _pick_tile_b(B, F_in):
    # Bytes per batch row kept live in VMEM (double-buffered):
    #   x tile (bf16) + output tile ((tile_b, 1) f32 pads to 128 lanes in VMEM).
    per_row = 2 * (F_in * 2) + 2 * (128 * 4)
    tile_b = (int(VMEM_STREAM_BUDGET) // per_row) // 8 * 8
    tile_b = min(tile_b, MAX_TILE_B)
    # Ensure >= 2 grid steps so dimension_semantics=("parallel",) can shard the
    # batch across both TensorCores on v7x (no-op on v5e / v6e).
    tile_b = min(tile_b, _round_up(pl.cdiv(B, 2), 8))
    return max(tile_b, 8)


# --------------------------------------------------------------------------
# Wrapper
# --------------------------------------------------------------------------
def prenet_linear_forward(x, params, *, tile_b=None):
    """x: (B, F_in) float32. params: dict of weights (see init_params)."""
    B, F_in = x.shape
    w1, b1, w2, b2, w3 = fold_and_pad_params(params)

    if tile_b is None:
        tile_b = _pick_tile_b(B, F_in)
    tile_b = max(8, _round_up(int(tile_b), 8))

    B_pad = _round_up(B, tile_b)
    xb = x.astype(jnp.bfloat16)                    # halve HBM traffic for x
    if B_pad != B:
        xb = jnp.pad(xb, ((0, B_pad - B), (0, 0)))  # tail rows padded with zeros

    grid = (B_pad // tile_b,)

    # Advisory cost: streaming x from HBM dominates; compute is 3 small matmuls.
    flops = 2 * B_pad * (F_in * H1P + H1P * H2P + H2P * OUT_P)
    bytes_accessed = (
        B_pad * F_in * 2                      # x (bf16)
        + B_pad * 4                           # output (f32)
        + sum(int(a.size) * a.dtype.itemsize for a in (w1, b1, w2, b2, w3))
    )
    cost = pl.CostEstimate(
        flops=flops, transcendentals=B_pad, bytes_accessed=bytes_accessed
    )

    out = pl.pallas_call(
        _prenet_kernel,
        out_shape=jax.ShapeDtypeStruct((B_pad, 1), jnp.float32),
        grid=grid,
        in_specs=[
            pl.BlockSpec((tile_b, F_in), lambda i: (i, 0)),   # x streamed per tile
            pl.BlockSpec((F_in, H1P), lambda i: (0, 0)),      # weights resident
            pl.BlockSpec((1, H1P), lambda i: (0, 0)),
            pl.BlockSpec((H1P, H2P), lambda i: (0, 0)),
            pl.BlockSpec((1, H2P), lambda i: (0, 0)),
            pl.BlockSpec((H2P, OUT_P), lambda i: (0, 0)),
        ],
        out_specs=pl.BlockSpec((tile_b, 1), lambda i: (i, 0)),
        compiler_params=pltpu.CompilerParams(
            dimension_semantics=("parallel",),        # batch sharded across TCs (v7x)
            vmem_limit_bytes=32 * 1024 * 1024,        # > v5e 16 MiB default; well
                                                      # under v7x 64 MiB physical
        ),
        cost_estimate=cost,
    )(xb, w1, b1, w2, b2, w3)

    return out[:B]


# --------------------------------------------------------------------------
# Params & reference
# --------------------------------------------------------------------------
def _linear_init(key, fan_in, fan_out):
    """Stand-in for PyTorch's default Linear init:
    U(-1/sqrt(fan_in), 1/sqrt(fan_in)) for both weight and bias."""
    kw, kb = jax.random.split(key)
    bound = 1.0 / jnp.sqrt(jnp.float32(fan_in))
    w = jax.random.uniform(kw, (fan_in, fan_out), jnp.float32, -bound, bound)
    b = jax.random.uniform(kb, (1, fan_out), jnp.float32, -bound, bound)
    return w, b


def init_params(key, in_features):
    keys = jax.random.split(key, 11)
    w1, b1 = _linear_init(keys[0], in_features, H1)
    w2, b2 = _linear_init(keys[1], H1, H2)
    w3, b3 = _linear_init(keys[2], H2, 1)
    # Non-trivial BN stats/affine so the folding path is actually exercised.
    params = {
        "w1": w1, "b1": b1,
        "g1": 1.0 + 0.1 * jax.random.normal(keys[3], (1, H1), jnp.float32),
        "beta1": 0.1 * jax.random.normal(keys[4], (1, H1), jnp.float32),
        "rm1": 0.1 * jax.random.normal(keys[5], (1, H1), jnp.float32),
        "rv1": jax.random.uniform(keys[6], (1, H1), jnp.float32, 0.5, 1.5),
        "w2": w2, "b2": b2,
        "g2": 1.0 + 0.1 * jax.random.normal(keys[7], (1, H2), jnp.float32),
        "beta2": 0.1 * jax.random.normal(keys[8], (1, H2), jnp.float32),
        "rm2": 0.1 * jax.random.normal(keys[9], (1, H2), jnp.float32),
        "rv2": jax.random.uniform(keys[10], (1, H2), jnp.float32, 0.5, 1.5),
        "w3": w3, "b3": b3,
    }
    return params


def _reference_forward(x, p):
    """Plain-JAX f32 reference (eval-mode semantics of the PyTorch module)."""
    h = x @ p["w1"] + p["b1"]
    h = (h - p["rm1"]) / jnp.sqrt(p["rv1"] + BN_EPS) * p["g1"] + p["beta1"]
    h = jnp.maximum(h, 0.0)
    h = h @ p["w2"] + p["b2"]
    h = (h - p["rm2"]) / jnp.sqrt(p["rv2"] + BN_EPS) * p["g2"] + p["beta2"]
    h = jnp.maximum(h, 0.0)
    h = h @ p["w3"] + p["b3"]
    return jax.nn.sigmoid(h)


if __name__ == "__main__":
    key = jax.random.PRNGKey(0)
    k_x, k_p = jax.random.split(key)

    batch = 10          # deliberately not a multiple of the tile: exercises padding
    in_features = 32

    x = jax.random.normal(k_x, (batch, in_features), jnp.float32)
    params = init_params(k_p, in_features)

    out = prenet_linear_forward(x, params)
    out = jax.block_until_ready(out)

    ref = _reference_forward(x, params)
    assert out.shape == (batch, 1)
    # bf16 MXU operands with f32 accumulation: relax tolerance vs f32 reference.
    assert jnp.allclose(out, ref, atol=2e-2, rtol=2e-2), (
        float(jnp.max(jnp.abs(out - ref)))
    )

    print("KERNEL_OK")
</pallas_src>

<mosaic_0001>
module attributes {stable_mosaic.version = 11 : i64} {
  func.func @_prenet_kernel(%arg0: i32, %arg1: memref<8x32xbf16, #tpu.memory_space<vmem>>, %arg2: memref<32x128xbf16, #tpu.memory_space<vmem>>, %arg3: memref<1x128xf32, #tpu.memory_space<vmem>>, %arg4: memref<128x128xbf16, #tpu.memory_space<vmem>>, %arg5: memref<1x128xf32, #tpu.memory_space<vmem>>, %arg6: memref<128x128xbf16, #tpu.memory_space<vmem>>, %arg7: memref<8x1xf32, #tpu.memory_space<vmem>>) attributes {dimension_semantics = [#tpu.dimension_semantics<parallel>], iteration_bounds = array<i64: 2>, scalar_prefetch = 0 : i64, scratch_operands = 0 : i64, tpu.core_type = #tpu.core_type<tc>, window_params = [{transform_indices = @transform_0, window_bounds = array<i64: 8, 32>}, {pipeline_mode = #tpu.pipeline_mode<synchronous>, transform_indices = @transform_1, window_bounds = array<i64: 32, 128>}, {pipeline_mode = #tpu.pipeline_mode<synchronous>, transform_indices = @transform_2, window_bounds = array<i64: 1, 128>}, {pipeline_mode = #tpu.pipeline_mode<synchronous>, transform_indices = @transform_3, window_bounds = array<i64: 128, 128>}, {pipeline_mode = #tpu.pipeline_mode<synchronous>, transform_indices = @transform_4, window_bounds = array<i64: 1, 128>}, {pipeline_mode = #tpu.pipeline_mode<synchronous>, transform_indices = @transform_5, window_bounds = array<i64: 128, 128>}, {transform_indices = @transform_6, window_bounds = array<i64: 8, 1>}]} {
    %c0 = arith.constant 0 : index
    %c0_0 = arith.constant 0 : index
    %0 = vector.load %arg1[%c0, %c0_0] : memref<8x32xbf16, #tpu.memory_space<vmem>>, vector<8x32xbf16>
    %c0_1 = arith.constant 0 : index
    %c0_2 = arith.constant 0 : index
    %1 = vector.load %arg2[%c0_1, %c0_2] : memref<32x128xbf16, #tpu.memory_space<vmem>>, vector<32x128xbf16>
    %cst = arith.constant dense<0.000000e+00> : vector<8x128xf32>
    %2 = tpu.matmul %0, %1, %cst {dimension_numbers = #tpu.dot_dimension_numbers<[1], [0], [0], [1], [0, 0, 1, 1], [], []>} : vector<8x32xbf16>, vector<32x128xbf16>, vector<8x128xf32> -> vector<8x128xf32>
    %c0_3 = arith.constant 0 : index
    %c0_4 = arith.constant 0 : index
    %3 = vector.load %arg3[%c0_3, %c0_4] : memref<1x128xf32, #tpu.memory_space<vmem>>, vector<1x128xf32>
    %4 = vector.broadcast %3 : vector<1x128xf32> to vector<8x128xf32>
    %5 = arith.addf %2, %4 : vector<8x128xf32>
    %cst_5 = arith.constant 0.000000e+00 : f32
    %6 = vector.broadcast %cst_5 : f32 to vector<8x128xf32>
    %7 = arith.maximumf %5, %6 : vector<8x128xf32>
    %8 = arith.truncf %7 : vector<8x128xf32> to vector<8x128xbf16>
    %c0_6 = arith.constant 0 : index
    %c0_7 = arith.constant 0 : index
    %9 = vector.load %arg4[%c0_6, %c0_7] : memref<128x128xbf16, #tpu.memory_space<vmem>>, vector<128x128xbf16>
    %cst_8 = arith.constant dense<0.000000e+00> : vector<8x128xf32>
    %10 = tpu.matmul %8, %9, %cst_8 {dimension_numbers = #tpu.dot_dimension_numbers<[1], [0], [0], [1], [0, 0, 1, 1], [], []>} : vector<8x128xbf16>, vector<128x128xbf16>, vector<8x128xf32> -> vector<8x128xf32>
    %c0_9 = arith.constant 0 : index
    %c0_10 = arith.constant 0 : index
    %11 = vector.load %arg5[%c0_9, %c0_10] : memref<1x128xf32, #tpu.memory_space<vmem>>, vector<1x128xf32>
    %12 = vector.broadcast %11 : vector<1x128xf32> to vector<8x128xf32>
    %13 = arith.addf %10, %12 : vector<8x128xf32>
    %cst_11 = arith.constant 0.000000e+00 : f32
    %14 = vector.broadcast %cst_11 : f32 to vector<8x128xf32>
    %15 = arith.maximumf %13, %14 : vector<8x128xf32>
    %16 = arith.truncf %15 : vector<8x128xf32> to vector<8x128xbf16>
    %c0_12 = arith.constant 0 : index
    %c0_13 = arith.constant 0 : index
    %17 = vector.load %arg6[%c0_12, %c0_13] : memref<128x128xbf16, #tpu.memory_space<vmem>>, vector<128x128xbf16>
    %cst_14 = arith.constant dense<0.000000e+00> : vector<8x128xf32>
    %18 = tpu.matmul %16, %17, %cst_14 {dimension_numbers = #tpu.dot_dimension_numbers<[1], [0], [0], [1], [0, 0, 1, 1], [], []>} : vector<8x128xbf16>, vector<128x128xbf16>, vector<8x128xf32> -> vector<8x128xf32>
    %19 = vector.extract_strided_slice %18 {offsets = [0, 0], sizes = [8, 1], strides = [1, 1]} : vector<8x128xf32> to vector<8x1xf32>
    %20 = arith.negf %19 : vector<8x1xf32>
    %21 = math.exp %20 : vector<8x1xf32>
    %cst_15 = arith.constant 1.000000e+00 : f32
    %22 = vector.broadcast %cst_15 : f32 to vector<8x1xf32>
    %23 = arith.addf %22, %21 : vector<8x1xf32>
    %24 = arith.divf %22, %23 : vector<8x1xf32>
    %c0_16 = arith.constant 0 : index
    %c0_17 = arith.constant 0 : index
    %25 = vector.load %arg7[%c0_16, %c0_17] : memref<8x1xf32, #tpu.memory_space<vmem>>, vector<8x1xf32>
    tpu.vector_store %arg7[%c0_16, %c0_17], %24 {strides = array<i32>} : memref<8x1xf32, #tpu.memory_space<vmem>>, vector<8x1xf32>,
    return
  }
  func.func @transform_0(%arg0: i32) -> (i32, i32) {
    %c0_i32 = arith.constant 0 : i32
    %c0_i32_0 = arith.constant 0 : i32
    return %arg0, %c0_i32 : i32, i32
  }
  func.func @transform_1(%arg0: i32) -> (i32, i32) {
    %c0_i32 = arith.constant 0 : i32
    %c0_i32_0 = arith.constant 0 : i32
    %c0_i32_1 = arith.constant 0 : i32
    return %c0_i32, %c0_i32_0 : i32, i32
  }
  func.func @transform_2(%arg0: i32) -> (i32, i32) {
    %c0_i32 = arith.constant 0 : i32
    %c0_i32_0 = arith.constant 0 : i32
    %c0_i32_1 = arith.constant 0 : i32
    return %c0_i32, %c0_i32_0 : i32, i32
  }
  func.func @transform_3(%arg0: i32) -> (i32, i32) {
    %c0_i32 = arith.constant 0 : i32
    %c0_i32_0 = arith.constant 0 : i32
    %c0_i32_1 = arith.constant 0 : i32
    return %c0_i32, %c0_i32_0 : i32, i32
  }
  func.func @transform_4(%arg0: i32) -> (i32, i32) {
    %c0_i32 = arith.constant 0 : i32
    %c0_i32_0 = arith.constant 0 : i32
    %c0_i32_1 = arith.constant 0 : i32
    return %c0_i32, %c0_i32_0 : i32, i32
  }
  func.func @transform_5(%arg0: i32) -> (i32, i32) {
    %c0_i32 = arith.constant 0 : i32
    %c0_i32_0 = arith.constant 0 : i32
    %c0_i32_1 = arith.constant 0 : i32
    return %c0_i32, %c0_i32_0 : i32, i32
  }
  func.func @transform_6(%arg0: i32) -> (i32, i32) {
    %c0_i32 = arith.constant 0 : i32
    %c0_i32_0 = arith.constant 0 : i32
    return %arg0, %c0_i32 : i32, i32
  }
}

</mosaic_0001>

<bundles_post_ra>
// kernel: tpu_custom_call.1
= control target key start
LH: loop header
LB: loop body
LE: loop exit
PB: predicated region body
PF: predicated region fallthrough
CT: control target
= control target key end

     0   :  { %11 = vsyncpa [#allocation3], 0  ;;  %s1157_s0 = inlined_call_operand.hbm [shape: bf16[16,32], index: 0, kind: input, shape index: {}]   ;;  %s1158_s1 = inlined_call_operand.hbm [shape: bf16[32,128], index: 1, kind: input, shape index: {}]   ;;  %s1159_s2 = inlined_call_operand.vmem [shape: f32[1,128], index: 2, kind: input, shape index: {}]   ;;  %s1160_s3 = inlined_call_operand.hbm [shape: bf16[128,128], index: 3, kind: input, shape index: {}]   ;;  %s1161_s4 = inlined_call_operand.vmem [shape: f32[1,128], index: 4, kind: input, shape index: {}]   ;;  %s1162_s5 = inlined_call_operand.hbm [shape: bf16[128,128], index: 5, kind: input, shape index: {}]   ;;  %s1163_s6 = inlined_call_operand.vmem [shape: f32[16,1], index: 6, kind: output, shape index: {}]  }
   0x1   :  { %13 = vsyncpa [#allocation3 + $0x1], 0 }
   0x2   :  { %14 = vsyncpa [#allocation5], 0 }
   0x3   :  { %15 = vsyncpa [#allocation8], 0  ;;  %s1025_s21 = smov 0   ;;  %s1027_s22 = smov 0  }
   0x4   :  { %s1029_s23 = smov 0   ;;  %s1031_s24 = smov 0  }
   0x5 LB: > { %s194_s27 = sshll.u32 %s1158_s1, 4  ;;  %s1049_s28 = sadd.s32 4294967295, %s983_s24   ;;  %s983_s24 = sphi %s1031_s24, %s1171_s24   ;;  %s979_s23 = sphi %s1029_s23, %s1170_s23   ;;  %s975_s22 = sphi %s1027_s22, %s1169_s22   ;;  %s971_s21 = sphi %s1025_s21, %s1168_s21   ;;  %s195_s27 = int_to_ptr.hbm [resolvable:$true] %s194_s27 }
   0x6   : > { %p636_p0 = scmp.ge.s32.totalorder %s983_s24, 1  ;;  %p42_p1 = scmp.eq.s32.totalorder %s1049_s28, 0 }
   0x7   : > { %p183_p2 = scmp.lt.s32.totalorder %s983_s24, 3  ;;  %s985_s30 = smov [#allocation4]  }
   0x8   : > { %s196_s7 = sshll.u32 %s985_s30, 4  ;;  %s211_s10 = sshll.u32 %s1160_s3, 4  ;;  %s197_s7 = int_to_ptr.vmem [resolvable:$true] %s196_s7  ;;  %s212_s10 = int_to_ptr.hbm [resolvable:$true] %s211_s10 }
   0x9   : > { %p1054_p3 = pnand %p636_p0, %p183_p2  ;;  %s228_s14 = sshll.u32 %s1162_s5, 4  ;;  %s229_s14 = int_to_ptr.hbm [resolvable:$true] %s228_s14 }
   0xa   : > { %s986_s15 = smov [#allocation6]   ;;  %s987_s17 = smov 64  }
   0xb   : > { %p757_p4 = pneg %p1054_p3  ;;  %s213_s16 = sshll.u32 %s986_s15, 4  ;;  %s214_s16 = int_to_ptr.vmem [resolvable:$true] %s213_s16 }
   0xc   : > { %s988_s18 = smov 4   ;;  %s989_s19 = smov [#allocation7]  }
   0xd   : > { %p1065_p5 = pnand %p757_p4, %p42_p1  ;;  %s230_s20 = sshll.u32 %s989_s19, 4  ;;  %s231_s20 = int_to_ptr.vmem [resolvable:$true] %s230_s20 }
   0xe   : > { %s1079_s25 = sadd.s32 1, %s983_s24   ;;  %s28_s30 = sadd.s32 1, %s979_s23 }
   0xf   : > { %760 = dma.hbm_to_vmem [thread:$0]  (!%p1065_p5), %s195_s27, 256, %s197_s7, [#allocation5], %s987_s17, %s987_s17, %s988_s18  }
  0x10   : > { %763 = dma.hbm_to_vmem [thread:$0]  (!%p1065_p5), %s212_s10, 1024, %s214_s16, [#allocation5], %s987_s17, %s987_s17, %s988_s18  }
  0x11   : > { %766 = dma.hbm_to_vmem [thread:$0]  (!%p1065_p5), %s229_s14, 1024, %s231_s20, [#allocation8], %s987_s17, %s987_s17, %s988_s18  }
  0x12   : > { %s25_s26 = ssub.s32 %s983_s24, %s1079_s25  ;;  %p35_p7 = scmp.ne.s32.totalorder %s979_s23, %s975_s22 }
  0x13   : > { %p26_p6 = scmp.eq.s32.totalorder %s25_s26, 0  ;;  %p36_p8 = scmp.eq.s32.totalorder %s983_s24, 0 }
  0x14   : > { %p41_p9 = scmp.ne.s32.totalorder %s975_s22, %s971_s21  ;;  %p774_p12 = scmp.lt.s32.totalorder %s983_s24, 2 }
  0x15   : > { %s1090_s27 = scalar_select %p26_p6, %s979_s23, %s28_s30  }
  0x16   : > { %p37_p10 = por %p36_p8, %p35_p7  ;;  %p1094_p11 = por %p42_p1, %p41_p9 }
  0x17   : > { %s244_s8 = sand.u32 1, %s979_s23   ;;  %s642_s10 = sshll.u32 %s983_s24, 2 }
  0x18   : > { %s641_s9 = sshll.u32 %s244_s8, 2  ;;  %s252_s13 = scalar_lea.hbm %s1157_s0, %s642_s10 }
  0x19   : > { %s248_s14 = scalar_lea.vmem [#allocation2], %s641_s9  ;;  %s254_s16 = sshll.u32 %s252_s13, 4  ;;  %s255_s16 = int_to_ptr.hbm [resolvable:$true] %s254_s16 }
  0x1a   : > { %s256_s15 = sshll.u32 %s248_s14, 4  ;;  %p1104_p13 = pnand %p774_p12, %p37_p10  ;;  %s257_s15 = int_to_ptr.vmem [resolvable:$true] %s256_s15 }
  0x1b   : > { %s245_s17 = scalar_lea.sflag [#allocation3], %s244_s8  ;;  %s911_s18 = sshra.s32 %s255_s16, 4  ;;  %s912_s18 = int_to_ptr.hbm [resolvable:$true] %s911_s18 }
  0x1c   : > { %s913_s19 = scalar_lea.hbm %s912_s18, 4  ;;  %p915_p2 = pneg %p1104_p13 }
  0x1d   : > { %p914_p0 = scmp.ne.s32.totalorder %s912_s18, %s913_s19  ;;  %s918_s26 = scalar_lea.hbm %s1157_s0, 8 }
  0x1e   : > { %p919_p6 = scmp.lt.s32.totalorder %s912_s18, %s1157_s0  ;;  %p920_p7 = scmp.lt.s32.totalorder %s918_s26, %s913_s19 }
  0x1f   : > { %p916_p4 = pnand %p915_p2, %p914_p0 }
  0x20   : > { %p921_p8 = por %p920_p7, %p919_p6 }
  0x21   : > { %p917_p5 = pneg %p916_p4 }
  0x23   : > { %p922_p9 = pnand %p921_p8, %p917_p5 }
  0x25   : > { %925 = shalt.err (!%p922_p9)
}
  0x26   : > { %770 = dma.hbm_to_vmem [thread:$0]  (!%p1104_p13), %s255_s16, 64, %s257_s15, %s245_s17  }
  0x27   : > { %265 = sbr.rel (%p1054_p3) target bundleno = 482 (0x1e2), region = 44  ;;  %s267_s8 = sand.u32 (!%p1054_p3), 1, %s975_s22  }
  0x28   : > { %s644_s10 = sshll.u32 (!%p1054_p3), %s267_s8, 2  ;;  %s268_s11 = scalar_lea.sflag (!%p1054_p3), [#allocation3], %s267_s8 }
  0x29   : > { %s271_s12 = scalar_lea.vmem (!%p1054_p3), [#allocation2], %s644_s10 }
  0x2c   : > { %958 = dma.done.wait (%p1094_p11), %s268_s11, 64  }
  0x2d   : > { %960 = vsyncadd (%p1094_p11), %s268_s11, 4294967232 }
  0x2e   : > { %962 = dma.done.wait (%p42_p1), [#allocation5], 1280  }
  0x2f   : > { %964 = vsyncadd (%p42_p1), [#allocation5], 4294966016 }
  0x30   : > { %966 = dma.done.wait (%p42_p1), [#allocation8], 1024  }
  0x31   : > { %968 = vsyncadd (%p42_p1), [#allocation8], 4294966272  ;;  %v726_v0 = vld [vmem:[#allocation4 + $0x8] sm:$0xff]  ;;  %v725_v2 = vld [vmem:[#allocation4] sm:$0xff]  ;;  %vm341_vm0 = vcmask 261120   ;;  %p315_p1 = scmp.lt.s32.totalorder %s1049_s28, 1 }
  0x32   : > { %v734_v1 = vld [vmem:[#allocation6 + $0x38] sm:$0xff]  ;;  %351 = vmatpush.bf16.msra.mxu0 %v726_v0  ;;  %v733_v3 = vld [vmem:[#allocation6 + $0x30] sm:$0xff]  ;;  %v320_v4 = vld [vmem:[%s271_s12] sm:$0xf]  ;;  %vm539_vm4 = vcmask 7168  }
  0x33   : > { %428 = vmatpush.bf16.msra.mxu1 %v734_v1  ;;  %v732_v5 = vld [vmem:[#allocation6 + $0x28] sm:$0xff]  ;;  %v731_v6 = vld [vmem:[#allocation6 + $0x20] sm:$0xff]  ;;  %v730_v7 = vld [vmem:[#allocation6 + $0x18] sm:$0xff]  ;;  %s1173_s28 = smov (!%p315_p1, %s1049_s28), 1 }
  0x34   : > { %v729_v8 = vld [vmem:[#allocation6 + $0x10] sm:$0xff]  ;;  %v728_v9 = vld [vmem:[#allocation6 + $0x8] sm:$0xff]  ;;  %v727_v10 = vld [vmem:[#allocation6] sm:$0xff]  ;;  %s648_s15 = sshll.u32 %s1173_s28, 3 }
  0x35   : > { %v742_v11 = vld [vmem:[#allocation7 + $0x38] sm:$0xff]  ;;  %v741_v12 = vld [vmem:[#allocation7 + $0x30] sm:$0xff]  ;;  %v740_v13 = vld [vmem:[#allocation7 + $0x28] sm:$0xff]  ;;  %s318_s17 = scalar_lea.vmem %s1163_s6, %s648_s15 }
  0x36   : > { %352 = vmatpush.bf16.msra.mxu0 %v725_v2  ;;  %507 = vmatpush.bf16.msra.mxu2 %v742_v11  ;;  %v739_v14 = vld [vmem:[#allocation7 + $0x20] sm:$0xff]  ;;  %v738_v15 = vld [vmem:[#allocation7 + $0x18] sm:$0xff]  ;;  %v737_v16 = vld [vmem:[#allocation7 + $0x10] sm:$0xff] }
  0x37   : > { %429 = vmatpush.bf16.msra.mxu1 %v733_v3  ;;  %v815_v17 = vld [vmem:[%s1159_s2] ss:$0 sm:$0xff]  ;;  %v735_v24 = vld [vmem:[#allocation7] sm:$0xff] }
  0x38   : > { %v736_v23 = vld [vmem:[#allocation7 + $0x8] sm:$0xff] }
  0x39   : > { %657 = vmatmul.msk.bf16.vlgmr.msra.gmra.mxu0 %vm341_vm0, %v320_v4  ;;  %v816_v25 = vld [vmem:[%s1161_s4] ss:$0 sm:$0xff] }
  0x3a   : > { %508 = vmatpush.bf16.msra.mxu2 %v741_v12 }
  0x3b   : > { %430 = vmatpush.bf16.msra.mxu1 %v732_v5 }
  0x3e   : > { %509 = vmatpush.bf16.msra.mxu2 %v740_v13 }
  0x3f   : > { %431 = vmatpush.bf16.msra.mxu1 %v731_v6 }
  0x42   : > { %510 = vmatpush.bf16.msra.mxu2 %v739_v14 }
  0x43   : > { %432 = vmatpush.bf16.msra.mxu1 %v730_v7 }
  0x46   : > { %511 = vmatpush.bf16.msra.mxu2 %v738_v15 }
  0x47   : > { %433 = vmatpush.bf16.msra.mxu1 %v729_v8 }
  0x4a   : > { %512 = vmatpush.bf16.msra.mxu2 %v737_v16 }
  0x4b   : > { %434 = vmatpush.bf16.msra.mxu1 %v728_v9 }
  0x4e   : > { %513 = vmatpush.bf16.msra.mxu2 %v736_v23 }
  0x4f   : > { %435 = vmatpush.bf16.msra.mxu1 %v727_v10 }
  0x52   : > { %514 = vmatpush.bf16.msra.mxu2 %v735_v24 }
  0xb6   : > { %v354_v18 = vpop.f32.mrf.mxu0 }
  0xb7   : > { %v355_v19 = vadd.f32 %v815_v17, %v354_v18 }
  0xb9   : > { %v358_v20 = vmax.f32 %v355_v19, 0.0 }
  0xbb   : > { %v359_v21 = vpack.c.bf16 %v358_v20, %v358_v20 }
  0xbd   : > { %436 = vmatmul.bf16.vlgmr.msra.gmra.mxu1 %v359_v21 }
  0xbe   : > { %v356_v22 = vpop.f32.mrf.mxu0 }
 0x13a   : > { %v437_v26 = vpop.f32.mrf.mxu1 }
 0x13b   : > { %v438_v27 = vadd.f32 %v816_v25, %v437_v26 }
 0x13d   : > { %v441_v28 = vmax.f32 %v438_v27, 0.0 }
 0x13f   : > { %v442_v29 = vpack.c.bf16 %v441_v28, %v441_v28 }
 0x141   : > { %515 = vmatmul.bf16.vlgmr.msra.gmra.mxu2 %v442_v29 }
 0x142   : > { %v439_v30 = vpop.f32.mrf.mxu1 }
 0x1c4   : > { %v516_v31 = vpop.f32.mrf.mxu2 }
 0x1c5   : > { %v722_v32 = vmul.f32 -1.442695, %v516_v31 }
 0x1c7   : > { %817 = vpow2.f32 %v722_v32 }
 0x1cc   : > { %v518_v33 = vpop.f32.mrf.mxu2 }
 0x1cd   : > { %v818_v34 = vpop.eup %817 }
 0x1ce   : > { %v523_v35 = vadd.f32 1.0, %v818_v34 }
 0x1d0   : > { %819 = vrcp.f32 %v523_v35  ;;  %v535_v39 = vand.u32 2147483648, %v523_v35  ;;  %v533_v41 = vand.u32 2147483647, %v523_v35  ;;  %vm529_vm2 = vweird.f32 %v523_v35 }
 0x1d2   : > { %v536_v43 = vor.u32 1.1754944e-38, %v535_v39  ;;  %vm534_vm5 = vcmp.eq.f32.partialorder %v533_v41, 8.507059e+37 }
 0x1d6   : > { %v820_v36 = vpop.eup %819 }
 0x1d7   : > { %v525_v37 = vmul.f32 %v820_v36, %v523_v35  ;;  %vm530_vm1 = vweird.f32 %v820_v36 }
 0x1d8   : > { %vm531_vm3 = vmor %vm529_vm2, %vm530_vm1 }
 0x1d9   : > { %v526_v38 = vsub.f32 1.0, %v525_v37 }
 0x1db   : > { %v527_v40 = vmul.f32 %v820_v36, %v526_v38 }
 0x1dd   : > { %v528_v42 = vadd.f32 %v820_v36, %v527_v40 }
 0x1df   : > { %v532_v44 = vsel %vm531_vm3, %v820_v36, %v528_v42 }
 0x1e0   : > { %v537_v45 = vsel %vm534_vm5, %v536_v43, %v532_v44 }
 0x1e1   : > { %540 = vst.msk [vmem:[%s318_s17] sm:$0xff] %vm539_vm4, %v537_v45 }
 0x1e2 PF: > { %p18_p3 = scmp.ge.s32.totalorder %s1079_s25, 4   ;;  %s1168_s21 = smov %s975_s22 }
 0x1e3   : > { %s1169_s22 = smov %s979_s23  ;;  %s1170_s23 = smov %s1090_s27 }
 0x1e4   : > { %s1171_s24 = smov %s1079_s25  ;;  %20 = sbr.rel (!%p18_p3) target bundleno = 5 (0x5), region = 96 }
 0x1e9   :  { %560 = vsyncpa [#allocation3], 1 }
 0x1ea   :  { %562 = vsyncpa [#allocation3 + $0x1], 1 }
 0x1eb   :  { %563 = vsyncpa [#allocation5], 1 }
 0x1ec   :  { %564 = vsyncpa [#allocation8], 1 }

</bundles_post_ra>
